<compile_context>
chip_gen: v7x
topology: tpu7x:2x2x1
jax: 0.10.0
libtpu: 0.0.40
codegen_flags: <defaults>
</compile_context>

<pallas_src>
import jax
import jax.numpy as jnp
import numpy as np
from jax.experimental import pallas as pl
from jax.experimental.pallas import tpu as pltpu


# ------------------------------ fused kernel --------------------------------

def gin_fused_kernel(x0_ref, adj_ref, seg_ref, w1_ref, b1_ref, w2_ref, b2_ref,
                     xr_ref, xo_ref, xcur_ref, acc_ref):
    layer = pl.program_id(0)
    kt = pl.program_id(1)
    n_layers = pl.num_programs(0)
    n_kt = pl.num_programs(1)

    tk = adj_ref.shape[1]
    row0 = pl.multiple_of(kt * tk, tk)

    # Layer 0: stage this step's row tile of the (padded) input features into
    # the resident node-feature buffer (tiled DMA overlaps the MXU work; no
    # full-size x0 block is held in VMEM for the rest of the kernel).
    @pl.when(layer == 0)
    def _():
        xcur_ref[pl.ds(row0, tk), :] = x0_ref[...]

    # GIN aggregation, K-tiled:  acc (+)= (A + I)[:, ktile] @ x[ktile, :]
    # bf16 x bf16 on the MXU (adjacency entries are 0/1 so exact; x rounded
    # once per layer), f32 accumulation.
    xk = xcur_ref[pl.ds(row0, tk), :].astype(jnp.bfloat16)
    part = jnp.dot(adj_ref[...], xk, preferred_element_type=jnp.float32)

    @pl.when(kt == 0)
    def _():
        acc_ref[...] = part          # overwrite: no separate zero-init pass

    @pl.when(kt > 0)
    def _():
        acc_ref[...] += part

    # Layer finalize: MLP (Linear -> folded-BN -> ReLU -> Linear -> ReLU).
    @pl.when(kt == n_kt - 1)
    def _():
        h = jnp.dot(acc_ref[...], w1_ref[0],
                    preferred_element_type=jnp.float32) + b1_ref[0]
        h = jnp.maximum(h, 0.0)
        h2 = jnp.dot(h, w2_ref[0],
                     preferred_element_type=jnp.float32) + b2_ref[0]
        xcur_ref[...] = jnp.maximum(h2, 0.0)

    # Network finalize: node features out + segment-sum readout as a one-hot
    # MXU matmul.  NOTE: padded node rows carry ReLU(bias) garbage after
    # layer 1, but the padded adjacency columns and padded seg columns are
    # zero, so nothing leaks into real rows or into xr.
    @pl.when((kt == n_kt - 1) & (layer == n_layers - 1))
    def _():
        xo_ref[...] = xcur_ref[...]
        xr_ref[...] = jnp.dot(seg_ref[...].astype(jnp.float32), xcur_ref[...],
                              preferred_element_type=jnp.float32)


# ------------------------------- wrapper -------------------------------------

def _round_up(n, m):
    return ((n + m - 1) // m) * m


def _pad2(a, rows, cols):
    return jnp.pad(a, ((0, rows - a.shape[0]), (0, cols - a.shape[1])))


def _vmem_capacity_bytes():
    # Generation-aware VMEM capacity; fall back to the smallest per-core value
    # (v7x: 64 MiB) so the plan is safe on every generation.
    try:
        return int(pltpu.get_tpu_info().vmem_capacity_bytes)
    except Exception:
        return 64 << 20


def _plan_tiles(n_pad, dp, gp):
    """Pick the adjacency K-tile TK and an explicit vmem_limit_bytes.

    Prefers TK == Np, which makes the adjacency BlockSpec constant-index so the
    whole (A+I) matrix is fetched from HBM exactly once and stays VMEM-resident
    across all 5 layers; otherwise the largest streaming column tile that fits.
    """
    cap = int(_vmem_capacity_bytes() * 0.9)

    def fixed_bytes(tk):
        b = 2 * n_pad * dp * 4                  # xcur + acc scratches (f32)
        b += 2 * n_pad * dp * 4                 # xo output block (2 buffers)
        b += 2 * gp * dp * 4                    # xr output block
        b += 2 * gp * n_pad * 2                 # seg one-hot (bf16)
        b += 2 * 2 * (dp * dp * 4 + dp * 4)     # w1,b1,w2,b2 (2 buffers each)
        b += 2 * tk * dp * 4                    # x0 row tile (2 buffers)
        return b

    def adj_bytes(tk):
        return 2 * n_pad * tk * 2               # bf16, double-buffered

    candidates = [n_pad] + [t for t in (2048, 1024, 512, 256, 128)
                            if t < n_pad and n_pad % t == 0]
    tk = 128   # fallback (may exceed budget for very large Np; see TODO above)
    for t in candidates:
        if fixed_bytes(t) + adj_bytes(t) <= cap:
            tk = t
            break
    needed = fixed_bytes(tk) + adj_bytes(tk)
    vmem_limit = int(min(cap, max(needed + (8 << 20), 32 << 20)))
    return tk, vmem_limit


def gin_wop_forward(x, adj, indptr, all_params):
    """Default GIN_WOP path: use_drop=False, sub_mask=None (eval mode)."""
    # TODO(synk): Dropout(p=0.2) (use_drop=True) and the sub_mask row masking
    # are not implemented (both are off in the default forward).
    N, F = x.shape
    L = len(all_params)
    H = all_params[0][0].shape[1]
    zdim = all_params[-1][6].shape[1]
    G = int(indptr.shape[0]) - 1
    bn_eps = 1e-5

    LANE = 128
    Dp = _round_up(max(F, H, zdim), LANE)   # lane-dense channel width
    Np = _round_up(N, LANE)                 # padded node count
    Gp = _round_up(G, 8)                    # sublane-dense readout rows

    # Fold eval-mode BatchNorm1d (running stats) into W1/b1, zero-pad to Dp.
    w1s, b1s, w2s, b2s = [], [], [], []
    for (w1, b1, gamma, beta, rm, rv, w2, b2) in all_params:
        scale = gamma / jnp.sqrt(rv + bn_eps)
        w1f = w1 * scale[None, :]
        b1f = (b1 - rm) * scale + beta
        w1s.append(_pad2(w1f, Dp, Dp))
        b1s.append(_pad2(b1f[None, :], 1, Dp))
        w2s.append(_pad2(w2, Dp, Dp))
        b2s.append(_pad2(b2[None, :], 1, Dp))
    w1s = jnp.stack(w1s)            # (L, Dp, Dp)
    b1s = jnp.stack(b1s)            # (L, 1, Dp)
    w2s = jnp.stack(w2s)            # (L, Dp, Dp)
    b2s = jnp.stack(b2s)            # (L, 1, Dp)

    # Fold the eps=0 self-loop into the adjacency; 0/1 entries are exact bf16.
    adj_i = adj + jnp.eye(N, dtype=adj.dtype)
    adj_p = _pad2(adj_i, Np, Np).astype(jnp.bfloat16)

    x0 = _pad2(x, Np, Dp)

    # One-hot graph membership [Gp, Np] (bf16, exact) for segment_csr('sum').
    nodes = jnp.arange(Np, dtype=jnp.int32)
    seg = ((nodes[None, :] >= indptr[:-1, None]) &
           (nodes[None, :] < indptr[1:, None]))
    seg = jnp.pad(seg, ((0, Gp - G), (0, 0))).astype(jnp.bfloat16)

    TK, vmem_limit = _plan_tiles(Np, Dp, Gp)
    KT = Np // TK

    xr_p, x_p = pl.pallas_call(
        gin_fused_kernel,
        out_shape=(jax.ShapeDtypeStruct((Gp, Dp), jnp.float32),
                   jax.ShapeDtypeStruct((Np, Dp), jnp.float32)),
        grid_spec=pltpu.PrefetchScalarGridSpec(
            num_scalar_prefetch=0,
            grid=(L, KT),
            in_specs=[
                # x0 row tiles: streamed only during layer 0, constant after.
                pl.BlockSpec((TK, Dp),
                             lambda l, k: (jnp.where(l == 0, k, 0), 0)),
                # (A+I) column tiles; constant index (resident) when TK == Np.
                pl.BlockSpec((Np, TK), lambda l, k: (0, k)),
                pl.BlockSpec((Gp, Np), lambda l, k: (0, 0)),        # seg
                pl.BlockSpec((1, Dp, Dp), lambda l, k: (l, 0, 0)),  # W1 folded
                pl.BlockSpec((1, 1, Dp), lambda l, k: (l, 0, 0)),   # b1 folded
                pl.BlockSpec((1, Dp, Dp), lambda l, k: (l, 0, 0)),  # W2
                pl.BlockSpec((1, 1, Dp), lambda l, k: (l, 0, 0)),   # b2
            ],
            out_specs=[
                pl.BlockSpec((Gp, Dp), lambda l, k: (0, 0)),        # xr
                pl.BlockSpec((Np, Dp), lambda l, k: (0, 0)),        # x
            ],
            scratch_shapes=[
                pltpu.VMEM((Np, Dp), jnp.float32),   # resident node features
                pltpu.VMEM((Np, Dp), jnp.float32),   # aggregation accumulator
            ],
        ),
        compiler_params=pltpu.CompilerParams(
            dimension_semantics=("arbitrary", "arbitrary"),
            vmem_limit_bytes=vmem_limit),
    )(x0, adj_p, seg, w1s, b1s, w2s, b2s)

    return xr_p[:G, :zdim], x_p[:N, :zdim]


# --------------------------- pure-JAX reference ------------------------------

def gin_wop_reference(x, adj, indptr, all_params):
    bn_eps = 1e-5
    for (w1, b1, gamma, beta, rm, rv, w2, b2) in all_params:
        agg = adj @ x + x
        h = agg @ w1 + b1
        h = (h - rm) / jnp.sqrt(rv + bn_eps) * gamma + beta
        h = jnp.maximum(h, 0.0)
        x = jnp.maximum(h @ w2 + b2, 0.0)
    G = indptr.shape[0] - 1
    rows = []
    for g in range(G):
        s, e = int(indptr[g]), int(indptr[g + 1])
        rows.append(jnp.sum(x[s:e], axis=0))
    return jnp.stack(rows), x


# ------------------------------ parameter init -------------------------------

def init_params(key, n_feat, n_hidden, zdim):
    layer_dims = ([(n_feat, n_hidden, n_hidden)]
                  + [(n_hidden, n_hidden, n_hidden)] * 3
                  + [(n_hidden, n_hidden, zdim)])
    params = []
    for (fin, fmid, fout) in layer_dims:
        key, *ks = jax.random.split(key, 9)
        w1 = 0.1 * jax.random.normal(ks[0], (fin, fmid), jnp.float32)
        b1 = 0.1 * jax.random.normal(ks[1], (fmid,), jnp.float32)
        gamma = 1.0 + 0.1 * jax.random.normal(ks[2], (fmid,), jnp.float32)
        beta = 0.1 * jax.random.normal(ks[3], (fmid,), jnp.float32)
        run_mean = 0.1 * jax.random.normal(ks[4], (fmid,), jnp.float32)
        run_var = 1.0 + 0.5 * jax.random.uniform(ks[5], (fmid,), jnp.float32)
        w2 = 0.1 * jax.random.normal(ks[6], (fmid, fout), jnp.float32)
        b2 = 0.1 * jax.random.normal(ks[7], (fout,), jnp.float32)
        params.append((w1, b1, gamma, beta, run_mean, run_var, w2, b2))
    return params


if __name__ == "__main__":
    key = jax.random.PRNGKey(0)
    k_adj, k_x, k_p = jax.random.split(key, 3)

    N_NODES = 32     # total nodes across the batch of graphs
    N_FEAT = 16      # args.n_feat
    N_HIDDEN = 32    # args.n_hidden
    ZDIM = N_HIDDEN  # zdim=None -> n_hidden
    N_GRAPHS = 2

    # Dense symmetric 0/1 adjacency (adj_t), zero diagonal.
    a = jax.random.bernoulli(k_adj, 0.3, (N_NODES, N_NODES)).astype(jnp.float32)
    adj = jnp.maximum(a, a.T) * (1.0 - jnp.eye(N_NODES, dtype=jnp.float32))

    x = jax.random.normal(k_x, (N_NODES, N_FEAT), jnp.float32)
    # CSR pointers for segment_csr: graph 0 = nodes [0,16), graph 1 = [16,32).
    indptr = jnp.array([0, 16, 32], dtype=jnp.int32)

    params = init_params(k_p, N_FEAT, N_HIDDEN, ZDIM)

    xr, xn = gin_wop_forward(x, adj, indptr, params)
    jax.block_until_ready(xr)
    jax.block_until_ready(xn)

    xr_ref, xn_ref = gin_wop_reference(x, adj, indptr, params)
    # bf16 aggregation (per the perf review) rounds x once per layer, so the
    # tolerance is looser than the pure-f32 variant (~1e-3 rel/layer).
    np.testing.assert_allclose(np.asarray(xn), np.asarray(xn_ref),
                               rtol=3e-2, atol=2e-2)
    np.testing.assert_allclose(np.asarray(xr), np.asarray(xr_ref),
                               rtol=3e-2, atol=2e-2)

    assert xr.shape == (N_GRAPHS, ZDIM) and xn.shape == (N_NODES, ZDIM)
    print("KERNEL_OK")
</pallas_src>

<mosaic_0001>
module attributes {stable_mosaic.version = 11 : i64} {
  func.func @gin_fused_kernel(%arg0: i32, %arg1: i32, %arg2: memref<128x128xf32, #tpu.memory_space<vmem>>, %arg3: memref<128x128xbf16, #tpu.memory_space<vmem>>, %arg4: memref<8x128xbf16, #tpu.memory_space<vmem>>, %arg5: memref<1x128x128xf32, #tpu.memory_space<vmem>>, %arg6: memref<1x1x128xf32, #tpu.memory_space<vmem>>, %arg7: memref<1x128x128xf32, #tpu.memory_space<vmem>>, %arg8: memref<1x1x128xf32, #tpu.memory_space<vmem>>, %arg9: memref<8x128xf32, #tpu.memory_space<vmem>>, %arg10: memref<128x128xf32, #tpu.memory_space<vmem>>, %arg11: memref<128x128xf32, #tpu.memory_space<vmem>>, %arg12: memref<128x128xf32, #tpu.memory_space<vmem>>) attributes {dimension_semantics = [#tpu.dimension_semantics<arbitrary>, #tpu.dimension_semantics<arbitrary>], iteration_bounds = array<i64: 5, 1>, scalar_prefetch = 0 : i64, scratch_operands = 2 : i64, tpu.core_type = #tpu.core_type<tc>, window_params = [{transform_indices = @transform_0, window_bounds = array<i64: 128, 128>}, {transform_indices = @transform_1, window_bounds = array<i64: 128, 128>}, {pipeline_mode = #tpu.pipeline_mode<synchronous>, transform_indices = @transform_2, window_bounds = array<i64: 8, 128>}, {transform_indices = @transform_3, window_bounds = array<i64: 1, 128, 128>}, {transform_indices = @transform_4, window_bounds = array<i64: 1, 1, 128>}, {transform_indices = @transform_5, window_bounds = array<i64: 1, 128, 128>}, {transform_indices = @transform_6, window_bounds = array<i64: 1, 1, 128>}, {pipeline_mode = #tpu.pipeline_mode<synchronous>, transform_indices = @transform_7, window_bounds = array<i64: 8, 128>}, {pipeline_mode = #tpu.pipeline_mode<synchronous>, transform_indices = @transform_8, window_bounds = array<i64: 128, 128>}]} {
    %c128_i32 = arith.constant 128 : i32
    %0 = arith.muli %arg1, %c128_i32 : i32
    %1 = tpu.assume_multiple %0, 128 : i32
    %c0_i32 = arith.constant 0 : i32
    %2 = arith.cmpi eq, %arg0, %c0_i32 : i32
    %3 = arith.extui %2 : i1 to i32
    %c0_i32_0 = arith.constant 0 : i32
    %4 = arith.cmpi ne, %3, %c0_i32_0 : i32
    scf.if %4 {
      %c0_11 = arith.constant 0 : index
      %c0_12 = arith.constant 0 : index
      %24 = vector.load %arg2[%c0_11, %c0_12] : memref<128x128xf32, #tpu.memory_space<vmem>>, vector<128x128xf32>
      %25 = arith.index_cast %1 : i32 to index
      %c0_13 = arith.constant 0 : index
      %26 = vector.load %arg11[%25, %c0_13] : memref<128x128xf32, #tpu.memory_space<vmem>>, vector<128x128xf32>
      tpu.vector_store %arg11[%25, %c0_13], %24 {strides = array<i32>} : memref<128x128xf32, #tpu.memory_space<vmem>>, vector<128x128xf32>,
    } else {
    }
    %5 = arith.index_cast %1 : i32 to index
    %c0 = arith.constant 0 : index
    %6 = vector.load %arg11[%5, %c0] : memref<128x128xf32, #tpu.memory_space<vmem>>, vector<128x128xf32>
    %7 = arith.truncf %6 : vector<128x128xf32> to vector<128x128xbf16>
    %c0_1 = arith.constant 0 : index
    %c0_2 = arith.constant 0 : index
    %8 = vector.load %arg3[%c0_1, %c0_2] : memref<128x128xbf16, #tpu.memory_space<vmem>>, vector<128x128xbf16>
    %cst = arith.constant dense<0.000000e+00> : vector<128x128xf32>
    %9 = tpu.matmul %8, %7, %cst {dimension_numbers = #tpu.dot_dimension_numbers<[1], [0], [0], [1], [0, 0, 1, 1], [], []>} : vector<128x128xbf16>, vector<128x128xbf16>, vector<128x128xf32> -> vector<128x128xf32>
    %c0_i32_3 = arith.constant 0 : i32
    %10 = arith.cmpi eq, %arg1, %c0_i32_3 : i32
    %11 = arith.extui %10 : i1 to i32
    %c0_i32_4 = arith.constant 0 : i32
    %12 = arith.cmpi ne, %11, %c0_i32_4 : i32
    scf.if %12 {
      %c0_11 = arith.constant 0 : index
      %c0_12 = arith.constant 0 : index
      %24 = vector.load %arg12[%c0_11, %c0_12] : memref<128x128xf32, #tpu.memory_space<vmem>>, vector<128x128xf32>
      tpu.vector_store %arg12[%c0_11, %c0_12], %9 {strides = array<i32>} : memref<128x128xf32, #tpu.memory_space<vmem>>, vector<128x128xf32>,
    } else {
    }
    %c0_i32_5 = arith.constant 0 : i32
    %13 = arith.cmpi sgt, %arg1, %c0_i32_5 : i32
    %14 = arith.extui %13 : i1 to i32
    %c0_i32_6 = arith.constant 0 : i32
    %15 = arith.cmpi ne, %14, %c0_i32_6 : i32
    scf.if %15 {
      %c0_11 = arith.constant 0 : index
      %c0_12 = arith.constant 0 : index
      %24 = vector.load %arg12[%c0_11, %c0_12] : memref<128x128xf32, #tpu.memory_space<vmem>>, vector<128x128xf32>
      %25 = arith.addf %24, %9 : vector<128x128xf32>
      %c0_13 = arith.constant 0 : index
      %c0_14 = arith.constant 0 : index
      %26 = vector.load %arg12[%c0_13, %c0_14] : memref<128x128xf32, #tpu.memory_space<vmem>>, vector<128x128xf32>
      tpu.vector_store %arg12[%c0_13, %c0_14], %25 {strides = array<i32>} : memref<128x128xf32, #tpu.memory_space<vmem>>, vector<128x128xf32>,
    } else {
    }
    %c0_i32_7 = arith.constant 0 : i32
    %16 = arith.cmpi eq, %arg1, %c0_i32_7 : i32
    %17 = arith.extui %16 : i1 to i32
    %c0_i32_8 = arith.constant 0 : i32
    %18 = arith.cmpi ne, %17, %c0_i32_8 : i32
    scf.if %18 {
      %c0_11 = arith.constant 0 : index
      %c0_12 = arith.constant 0 : index
      %24 = vector.load %arg12[%c0_11, %c0_12] : memref<128x128xf32, #tpu.memory_space<vmem>>, vector<128x128xf32>
      %c0_13 = arith.constant 0 : index
      %c0_14 = arith.constant 0 : index
      %c0_15 = arith.constant 0 : index
      %25 = vector.load %arg5[%c0_13, %c0_14, %c0_15] : memref<1x128x128xf32, #tpu.memory_space<vmem>>, vector<1x128x128xf32>
      %26 = vector.shape_cast %25 : vector<1x128x128xf32> to vector<128x128xf32>
      %cst_16 = arith.constant dense<0.000000e+00> : vector<128x128xf32>
      %27 = tpu.matmul %24, %26, %cst_16 {dimension_numbers = #tpu.dot_dimension_numbers<[1], [0], [0], [1], [0, 0, 1, 1], [], []>} : vector<128x128xf32>, vector<128x128xf32>, vector<128x128xf32> -> vector<128x128xf32>
      %c0_17 = arith.constant 0 : index
      %c0_18 = arith.constant 0 : index
      %c0_19 = arith.constant 0 : index
      %28 = vector.load %arg6[%c0_17, %c0_18, %c0_19] : memref<1x1x128xf32, #tpu.memory_space<vmem>>, vector<1x1x128xf32>
      %29 = vector.shape_cast %28 : vector<1x1x128xf32> to vector<1x128xf32>
      %30 = vector.broadcast %29 : vector<1x128xf32> to vector<128x128xf32>
      %31 = arith.addf %27, %30 : vector<128x128xf32>
      %cst_20 = arith.constant 0.000000e+00 : f32
      %32 = vector.broadcast %cst_20 : f32 to vector<128x128xf32>
      %33 = arith.maximumf %31, %32 : vector<128x128xf32>
      %c0_21 = arith.constant 0 : index
      %c0_22 = arith.constant 0 : index
      %c0_23 = arith.constant 0 : index
      %34 = vector.load %arg7[%c0_21, %c0_22, %c0_23] : memref<1x128x128xf32, #tpu.memory_space<vmem>>, vector<1x128x128xf32>
      %35 = vector.shape_cast %34 : vector<1x128x128xf32> to vector<128x128xf32>
      %cst_24 = arith.constant dense<0.000000e+00> : vector<128x128xf32>
      %36 = tpu.matmul %33, %35, %cst_24 {dimension_numbers = #tpu.dot_dimension_numbers<[1], [0], [0], [1], [0, 0, 1, 1], [], []>} : vector<128x128xf32>, vector<128x128xf32>, vector<128x128xf32> -> vector<128x128xf32>
      %c0_25 = arith.constant 0 : index
      %c0_26 = arith.constant 0 : index
      %c0_27 = arith.constant 0 : index
      %37 = vector.load %arg8[%c0_25, %c0_26, %c0_27] : memref<1x1x128xf32, #tpu.memory_space<vmem>>, vector<1x1x128xf32>
      %38 = vector.shape_cast %37 : vector<1x1x128xf32> to vector<1x128xf32>
      %39 = vector.broadcast %38 : vector<1x128xf32> to vector<128x128xf32>
      %40 = arith.addf %36, %39 : vector<128x128xf32>
      %cst_28 = arith.constant 0.000000e+00 : f32
      %41 = vector.broadcast %cst_28 : f32 to vector<128x128xf32>
      %42 = arith.maximumf %40, %41 : vector<128x128xf32>
      %c0_29 = arith.constant 0 : index
      %c0_30 = arith.constant 0 : index
      %43 = vector.load %arg11[%c0_29, %c0_30] : memref<128x128xf32, #tpu.memory_space<vmem>>, vector<128x128xf32>
      tpu.vector_store %arg11[%c0_29, %c0_30], %42 {strides = array<i32>} : memref<128x128xf32, #tpu.memory_space<vmem>>, vector<128x128xf32>,
    } else {
    }
    %c0_i32_9 = arith.constant 0 : i32
    %19 = arith.cmpi eq, %arg1, %c0_i32_9 : i32
    %c4_i32 = arith.constant 4 : i32
    %20 = arith.cmpi eq, %arg0, %c4_i32 : i32
    %21 = arith.andi %19, %20 : i1
    %22 = arith.extui %21 : i1 to i32
    %c0_i32_10 = arith.constant 0 : i32
    %23 = arith.cmpi ne, %22, %c0_i32_10 : i32
    scf.if %23 {
      %c0_11 = arith.constant 0 : index
      %c0_12 = arith.constant 0 : index
      %24 = vector.load %arg11[%c0_11, %c0_12] : memref<128x128xf32, #tpu.memory_space<vmem>>, vector<128x128xf32>
      %c0_13 = arith.constant 0 : index
      %c0_14 = arith.constant 0 : index
      %25 = vector.load %arg10[%c0_13, %c0_14] : memref<128x128xf32, #tpu.memory_space<vmem>>, vector<128x128xf32>
      tpu.vector_store %arg10[%c0_13, %c0_14], %24 {strides = array<i32>} : memref<128x128xf32, #tpu.memory_space<vmem>>, vector<128x128xf32>,
      %c0_15 = arith.constant 0 : index
      %c0_16 = arith.constant 0 : index
      %26 = vector.load %arg4[%c0_15, %c0_16] : memref<8x128xbf16, #tpu.memory_space<vmem>>, vector<8x128xbf16>
      %27 = arith.extf %26 : vector<8x128xbf16> to vector<8x128xf32>
      %c0_17 = arith.constant 0 : index
      %c0_18 = arith.constant 0 : index
      %28 = vector.load %arg11[%c0_17, %c0_18] : memref<128x128xf32, #tpu.memory_space<vmem>>, vector<128x128xf32>
      %cst_19 = arith.constant dense<0.000000e+00> : vector<8x128xf32>
      %29 = tpu.matmul %27, %28, %cst_19 {dimension_numbers = #tpu.dot_dimension_numbers<[1], [0], [0], [1], [0, 0, 1, 1], [], []>} : vector<8x128xf32>, vector<128x128xf32>, vector<8x128xf32> -> vector<8x128xf32>
      %c0_20 = arith.constant 0 : index
      %c0_21 = arith.constant 0 : index
      %30 = vector.load %arg9[%c0_20, %c0_21] : memref<8x128xf32, #tpu.memory_space<vmem>>, vector<8x128xf32>
      tpu.vector_store %arg9[%c0_20, %c0_21], %29 {strides = array<i32>} : memref<8x128xf32, #tpu.memory_space<vmem>>, vector<8x128xf32>,
    } else {
    }
    return
  }
  func.func @transform_0(%arg0: i32, %arg1: i32) -> (i32, i32) {
    %c0_i32 = arith.constant 0 : i32
    %0 = arith.cmpi eq, %arg0, %c0_i32 : i32
    %c0_i32_0 = arith.constant 0 : i32
    %1 = arith.select %0, %arg1, %c0_i32_0 : i32
    %c0_i32_1 = arith.constant 0 : i32
    %c0_i32_2 = arith.constant 0 : i32
    return %1, %c0_i32_1 : i32, i32
  }
  func.func @transform_1(%arg0: i32, %arg1: i32) -> (i32, i32) {
    %c0_i32 = arith.constant 0 : i32
    %c0_i32_0 = arith.constant 0 : i32
    return %c0_i32, %arg1 : i32, i32
  }
  func.func @transform_2(%arg0: i32, %arg1: i32) -> (i32, i32) {
    %c0_i32 = arith.constant 0 : i32
    %c0_i32_0 = arith.constant 0 : i32
    %c0_i32_1 = arith.constant 0 : i32
    return %c0_i32, %c0_i32_0 : i32, i32
  }
  func.func @transform_3(%arg0: i32, %arg1: i32) -> (i32, i32, i32) {
    %c0_i32 = arith.constant 0 : i32
    %c0_i32_0 = arith.constant 0 : i32
    %c0_i32_1 = arith.constant 0 : i32
    return %arg0, %c0_i32, %c0_i32_0 : i32, i32, i32
  }
  func.func @transform_4(%arg0: i32, %arg1: i32) -> (i32, i32, i32) {
    %c0_i32 = arith.constant 0 : i32
    %c0_i32_0 = arith.constant 0 : i32
    %c0_i32_1 = arith.constant 0 : i32
    return %arg0, %c0_i32, %c0_i32_0 : i32, i32, i32
  }
  func.func @transform_5(%arg0: i32, %arg1: i32) -> (i32, i32, i32) {
    %c0_i32 = arith.constant 0 : i32
    %c0_i32_0 = arith.constant 0 : i32
    %c0_i32_1 = arith.constant 0 : i32
    return %arg0, %c0_i32, %c0_i32_0 : i32, i32, i32
  }
  func.func @transform_6(%arg0: i32, %arg1: i32) -> (i32, i32, i32) {
    %c0_i32 = arith.constant 0 : i32
    %c0_i32_0 = arith.constant 0 : i32
    %c0_i32_1 = arith.constant 0 : i32
    return %arg0, %c0_i32, %c0_i32_0 : i32, i32, i32
  }
  func.func @transform_7(%arg0: i32, %arg1: i32) -> (i32, i32) {
    %c0_i32 = arith.constant 0 : i32
    %c0_i32_0 = arith.constant 0 : i32
    %c0_i32_1 = arith.constant 0 : i32
    return %c0_i32, %c0_i32_0 : i32, i32
  }
  func.func @transform_8(%arg0: i32, %arg1: i32) -> (i32, i32) {
    %c0_i32 = arith.constant 0 : i32
    %c0_i32_0 = arith.constant 0 : i32
    %c0_i32_1 = arith.constant 0 : i32
    return %c0_i32, %c0_i32_0 : i32, i32
  }
}

</mosaic_0001>

<bundles_post_ra>
// kernel: tpu_custom_call.1
= control target key start
LH: loop header
LB: loop body
LE: loop exit
PB: predicated region body
PF: predicated region fallthrough
CT: control target
= control target key end

     0   :  { %s2713_s0 = inlined_call_operand.hbm [shape: f32[128,128], index: 0, kind: input, shape index: {}]   ;;  %s2714_s1 = inlined_call_operand.hbm [shape: bf16[128,128], index: 1, kind: input, shape index: {}]   ;;  %s2715_s2 = inlined_call_operand.hbm [shape: bf16[8,128], index: 2, kind: input, shape index: {}]   ;;  %s2716_s3 = inlined_call_operand.hbm [shape: f32[5,128,128], index: 3, kind: input, shape index: {}]   ;;  %s2717_s4 = inlined_call_operand.vmem [shape: f32[5,1,128], index: 4, kind: input, shape index: {}]   ;;  %s2718_s5 = inlined_call_operand.hbm [shape: f32[5,128,128], index: 5, kind: input, shape index: {}]   ;;  %s2719_s6 = inlined_call_operand.vmem [shape: f32[5,1,128], index: 6, kind: input, shape index: {}]   ;;  %s2720_s7 = inlined_call_operand.hbm [shape: f32[8,128], index: 7, kind: output, shape index: {0}]   ;;  %s2721_s8 = inlined_call_operand.hbm [shape: f32[128,128], index: 8, kind: output, shape index: {1}]  }
   0x1   :  { %2736 = sst [smem:[#allocation24_spill]] %s2714_s1 }
   0x2   :  { %2737 = sst [smem:[#allocation25_spill]] %s2716_s3 }
   0x3   :  { %2738 = sst [smem:[#allocation26_spill]] %s2717_s4 }
   0x4   :  { %2739 = sst [smem:[#allocation27_spill]] %s2719_s6 }
   0x5   :  { %2740 = sst [smem:[#allocation28_spill]] %s2720_s7 }
   0x6   :  { %2741 = sst [smem:[#allocation29_spill]] %s2721_s8 }
   0x7   :  { %14 = vsyncpa [#allocation5], 0 }
   0x8   :  { %16 = vsyncpa [#allocation5 + $0x1], 0 }
   0x9   :  { %17 = vsyncpa [#allocation8], 0 }
   0xa   :  { %18 = vsyncpa [#allocation11], 0 }
   0xb   :  { %20 = vsyncpa [#allocation11 + $0x1], 0 }
   0xc   :  { %21 = vsyncpa [#allocation6], 0 }
   0xd   :  { %22 = vsyncpa [#allocation15], 0  ;;  %s2339_s27 = smov 0   ;;  %s2341_s28 = smov 0  }
   0xe   :  { %s2343_s29 = smov 0   ;;  %s2345_s30 = smov 0  }
   0xf   :  { %s2347_s9 = smov 0   ;;  %s2349_s10 = smov 0  }
  0x10 LB: > { %2742 = sst [smem:[#allocation21_spill]] %s2264_s29  ;;  %s2368_s11 = sadd.s32 4294967295, %s2276_s10   ;;  %s2276_s10 = sphi %s2349_s10, %s28_s10   ;;  %s2272_s9 = sphi %s2347_s9, %s2778_s9   ;;  %s2268_s30 = sphi %s2345_s30, %s2777_s30   ;;  %s2264_s29 = sphi %s2343_s29, %s2773_s29   ;;  %s2260_s28 = sphi %s2341_s28, %s2776_s28   ;;  %s2256_s27 = sphi %s2339_s27, %s2775_s27  }
  0x11   : > { %p137_p0 = scmp.ne.s32.totalorder %s2260_s28, %s2256_s27  ;;  %p2722_p1 = scmp.eq.s32.totalorder %s2368_s11, 0 }
  0x12   : > { %p1474_p2 = scmp.ge.s32.totalorder %s2276_s10, 1  ;;  %p268_p3 = scmp.lt.s32.totalorder %s2276_s10, 6 }
  0x13   : > { %p2376_p4 = por %p2722_p1, %p137_p0  ;;  %s2278_s14 = smov [#allocation7]  }
  0x14   : > { %p2380_p5 = pnand %p1474_p2, %p268_p3  ;;  %s282_s15 = sshll.u32 %s2278_s14, 4  ;;  %s283_s15 = int_to_ptr.vmem [resolvable:$true] %s282_s15 }
  0x15   : > { %s2743_s12 = scalar_select %p2376_p4, 1, 0 }
  0x16   : > { %s2744_s13 = scalar_select %p2380_p5, 1, 0 }
  0x17   : > { %p1916_p6 = pneg %p2380_p5  ;;  %s2746_s1 = sld [smem:[#allocation24_spill]] }
  0x19   : > { %p2388_p7 = pnand %p1916_p6, %p2722_p1 }
  0x1b   : > { %p2728_p9 = pneg %p2388_p7 }
  0x1d   : > { %s2014_s19 = scalar_lea.hbm %s2746_s1, 1024 }
  0x1e   : > { %p2015_p8 = scmp.ne.s32.totalorder %s2746_s1, %s2014_s19  ;;  %p2021_p12 = scmp.lt.u32.totalorder %s2014_s19, %s2746_s1 }
  0x20   : > { %p2017_p10 = pnand %p2728_p9, %p2015_p8 }
  0x22   : > { %p2018_p11 = pneg %p2017_p10 }
  0x24   : > { %p2023_p13 = pnand %p2021_p12, %p2018_p11 }
  0x26   : > { %2026 = shalt.err (!%p2023_p13)
}
  0x27   : > { %s2027_s24 = scalar_lea.vmem %s283_s15, 1024  ;;  %p2035_p6 = scmp.lt.s32.totalorder %s283_s15, %s283_s15 }
  0x28   : > { %p2028_p0 = scmp.ne.s32.totalorder %s283_s15, %s2027_s24  ;;  %p2036_p1 = scmp.lt.s32.totalorder %s2027_s24, %s2027_s24 }
  0x2a   : > { %p2030_p2 = pnand %p2028_p0, %p2728_p9  ;;  %p2037_p4 = por %p2036_p1, %p2035_p6 }
  0x2c   : > { %p2031_p3 = pneg %p2030_p2 }
  0x2e   : > { %p2038_p5 = pnand %p2037_p4, %p2031_p3 }
  0x30   : > { %2041 = shalt.err (!%p2038_p5)
}
  0x31   : > { %s2279_s25 = smov 64   ;;  %s2280_s26 = smov 4  }
  0x32   : > { %1919 = dma.hbm_to_vmem [thread:$0]  (!%p2388_p7), %s2746_s1, 1024, %s283_s15, [#allocation8], %s2279_s25, %s2279_s25, %s2280_s26  }
  0x33   : > { %s40_s17 = sadd.s32 1, %s2272_s9  ;;  %s124_s18 = sadd.s32 1, %s2264_s29 }
  0x34   : > { %p42_p1 = scmp.ge.s32.totalorder %s40_s17, 5  ;;  %p131_p4 = scmp.ne.s32.totalorder %s2264_s29, %s2260_s28 }
  0x35   : > { %p2727_p5 = scmp.eq.s32.totalorder %s2276_s10, 0  ;;  %p2726_p8 = scmp.lt.s32.totalorder %s2276_s10, 5 }
  0x36   : > { %s2780_s17 = smov (%p42_p1, %s40_s17), 0  ;;  %s330_s20 = sand.u32 1, %s2276_s10  }
  0x37   : > { %2747 = sst [smem:[#allocation22_spill]] %s2780_s17  ;;  %p133_p10 = por %p2727_p5, %p131_p4 }
  0x38   : > { %s121_s19 = ssub.s32 %s2272_s9, %s2780_s17  ;;  %s332_s21 = sand.u32 1, %s2264_s29  }
  0x39   : > { %p122_p11 = scmp.eq.s32.totalorder %s121_s19, 0  ;;  %s2431_s15 = sshll.u32 %s332_s21, 7 }
  0x3a   : > { %s2725_s23 = sshll.u32 %s2272_s9, 11  ;;  %s2749_s3 = sld [smem:[#allocation25_spill]] }
  0x3b   : > { %s2429_s22 = scalar_select %p122_p11, %s2264_s29, %s124_s18  }
  0x3c   : > { %s334_s27 = scalar_lea.vmem [#allocation10], %s2431_s15  ;;  %p2444_p12 = pnand %p2726_p8, %p133_p10 }
  0x3d   : > { %2748 = sst [smem:[#allocation23_spill]] %s2429_s22  ;;  %s341_s14 = sshll.u32 %s334_s27, 4  ;;  %s2448_s14 = int_to_ptr.vmem [resolvable:$true] %s341_s14 }
  0x3e   : > { %s2750_s18 = scalar_select %p2444_p12, 1, 0 }
  0x3f   : > { %s2450_s19 = scalar_lea.sflag [#allocation11], %s330_s20  ;;  %p2733_p0 = pneg %p2444_p12 }
  0x40   : > { %s2439_s26 = scalar_lea.hbm %s2749_s3, %s2725_s23  ;;  %s2047_s27 = scalar_lea.hbm %s2749_s3, 10240 }
  0x41   : > { %s2042_s21 = scalar_lea.hbm %s2439_s26, 2048  ;;  %p2048_p6 = scmp.lt.u32.totalorder %s2439_s26, %s2749_s3 }
  0x42   : > { %p2043_p13 = scmp.ne.s32.totalorder %s2439_s26, %s2042_s21  ;;  %p2049_p1 = scmp.lt.u32.totalorder %s2047_s27, %s2042_s21 }
  0x43   : > { %p2051_p10 = scmp.lt.u32.totalorder %s2042_s21, %s2439_s26 }
  0x44   : > { %p2045_p2 = pnand %p2733_p0, %p2043_p13  ;;  %p2050_p4 = por %p2049_p1, %p2048_p6 }
  0x46   : > { %p2046_p3 = pneg %p2045_p2  ;;  %p2052_p11 = por %p2051_p10, %p2050_p4 }
  0x48   : > { %p2053_p8 = pnand %p2052_p11, %p2046_p3 }
  0x4a   : > { %2056 = shalt.err (!%p2053_p8)
}
  0x4b   : > { %s2057_s20 = scalar_lea.vmem %s2448_s14, 2048  ;;  %s2281_s24 = smov [#allocation10]  }
  0x4c   : > { %p2058_p13 = scmp.ne.s32.totalorder %s2448_s14, %s2057_s20  ;;  %s2062_s25 = sshll.u32 %s2281_s24, 4  ;;  %s2063_s25 = int_to_ptr.vmem [resolvable:$false] %s2062_s25 }
  0x4d   : > { %s2064_s1 = scalar_lea.vmem %s2063_s25, 4096  ;;  %p2065_p9 = scmp.lt.s32.totalorder %s2448_s14, %s2063_s25 }
  0x4e   : > { %p2060_p2 = pnand %p2058_p13, %p2733_p0  ;;  %p2066_p6 = scmp.lt.s32.totalorder %s2064_s1, %s2057_s20 }
  0x50   : > { %p2061_p5 = pneg %p2060_p2  ;;  %p2067_p1 = por %p2066_p6, %p2065_p9 }
  0x52   : > { %p2068_p4 = pnand %p2067_p1, %p2061_p5 }
  0x54   : > { %2071 = shalt.err (!%p2068_p4)
}
  0x55   : > { %s2282_s23 = smov 128   ;;  %s2283_s21 = smov 8  }
  0x56   : > { %1929 = dma.hbm_to_vmem [thread:$0]  (!%p2444_p12), %s2439_s26, 2048, %s2448_s14, %s2450_s19, %s2282_s23, %s2282_s23, %s2283_s21  }
  0x57   : > { %s2751_s27 = sshll.u32 %s2272_s9, 11  ;;  %s361_s1 = scalar_lea.vmem [#allocation12], %s2431_s15 }
  0x58   : > { %s2486_s25 = scalar_lea.hbm %s2718_s5, %s2751_s27  ;;  %s368_s3 = sshll.u32 %s361_s1, 4  ;;  %s2517_s3 = int_to_ptr.vmem [resolvable:$true] %s368_s3 }
  0x59   : > { %s2284_s17 = smov [#allocation9]   ;;  %s2072_s7 = scalar_lea.hbm %s2715_s2, 64 }
  0x5a   : > { %s296_s22 = sshll.u32 %s2284_s17, 4  ;;  %p2073_p9 = scmp.ne.s32.totalorder %s2715_s2, %s2072_s7  ;;  %s297_s22 = int_to_ptr.vmem [resolvable:$true] %s296_s22 }
  0x5b   : > { %p2752_p5 = pneg %p2388_p7  ;;  %p2079_p10 = scmp.lt.u32.totalorder %s2072_s7, %s2715_s2 }
  0x5d   : > { %p2075_p8 = pnand %p2073_p9, %p2752_p5 }
  0x5f   : > { %p2076_p3 = pneg %p2075_p8 }
  0x61   : > { %p2081_p11 = pnand %p2079_p10, %p2076_p3 }
  0x63   : > { %2084 = shalt.err (!%p2081_p11)
}
  0x64   : > { %s2085_s17 = scalar_lea.vmem %s297_s22, 64  ;;  %p2753_p2 = pmov %p2752_p5 }
  0x65   : > { %p2086_p13 = scmp.ne.s32.totalorder %s297_s22, %s2085_s17  ;;  %p2093_p4 = scmp.lt.s32.totalorder %s297_s22, %s297_s22 }
  0x66   : > { %p2094_p0 = scmp.lt.s32.totalorder %s2085_s17, %s2085_s17 }
  0x67   : > { %p2088_p6 = pnand %p2086_p13, %p2753_p2 }
  0x68   : > { %p2095_p12 = por %p2094_p0, %p2093_p4 }
  0x69   : > { %p2089_p1 = pneg %p2088_p6 }
  0x6b   : > { %p2096_p5 = pnand %p2095_p12, %p2089_p1 }
  0x6d   : > { %2099 = shalt.err (!%p2096_p5)
}
  0x6e   : > { %1922 = dma.hbm_to_vmem [thread:$0]  (!%p2388_p7), %s2715_s2, 64, %s297_s22, [#allocation8]  }
  0x6f   : > { %s2285_s7 = smov [#allocation4]   ;;  %p2754_p9 = scmp.eq.s32.totalorder %s2276_s10, 0 }
  0x70   : > { %s320_s8 = sshll.u32 %s2285_s7, 4  ;;  %p2755_p8 = scmp.lt.s32.totalorder %s2276_s10, 5  ;;  %s321_s8 = int_to_ptr.vmem [resolvable:$true] %s320_s8 }
  0x71   : > { %s2100_s27 = scalar_lea.hbm %s2713_s0, 2048 }
  0x72   : > { %p2513_p3 = pnand %p2755_p8, %p2754_p9  ;;  %p2101_p7 = scmp.ne.s32.totalorder %s2713_s0, %s2100_s27 }
  0x73   : > { %p2107_p11 = scmp.lt.u32.totalorder %s2100_s27, %s2713_s0 }
  0x74   : > { %p2102_p12 = pneg %p2513_p3 }
  0x76   : > { %p2103_p0 = pnand %p2102_p12, %p2101_p7 }
  0x78   : > { %p2104_p10 = pneg %p2103_p0 }
  0x7a   : > { %p2109_p13 = pnand %p2107_p11, %p2104_p10 }
  0x7c   : > { %2112 = shalt.err (!%p2109_p13)
}
  0x7d   : > { %s2113_s26 = scalar_lea.vmem %s321_s8, 2048  ;;  %s2120_s14 = scalar_lea.vmem %s321_s8, 4096 }
  0x7e   : > { %p2114_p2 = scmp.ne.s32.totalorder %s321_s8, %s2113_s26  ;;  %p2121_p4 = scmp.lt.s32.totalorder %s321_s8, %s321_s8 }
  0x7f   : > { %p2122_p5 = scmp.lt.s32.totalorder %s2120_s14, %s2113_s26 }
  0x80   : > { %p2116_p6 = pnand %p2114_p2, %p2102_p12 }
  0x81   : > { %p2123_p9 = por %p2122_p5, %p2121_p4 }
  0x82   : > { %p2117_p1 = pneg %p2116_p6 }
  0x84   : > { %p2124_p8 = pnand %p2123_p9, %p2117_p1 }
  0x86   : > { %2127 = shalt.err (!%p2124_p8)
}
  0x87   : > { %1926 = dma.hbm_to_vmem [thread:$0]  (!%p2513_p3), %s2713_s0, 2048, %s321_s8, [#allocation5], %s2282_s23, %s2282_s23, %s2283_s21  }
  0x88   : > { %s2128_s6 = scalar_lea.hbm %s2486_s25, 2048  ;;  %p2757_p12 = scmp.ne.s32.totalorder %s2750_s18, 0 }
  0x89   : > { %p2129_p7 = scmp.ne.s32.totalorder %s2486_s25, %s2128_s6  ;;  %s2133_s15 = scalar_lea.hbm %s2718_s5, 10240 }
  0x8a   : > { %p2758_p0 = pneg %p2757_p12  ;;  %p2134_p13 = scmp.lt.u32.totalorder %s2486_s25, %s2718_s5 }
  0x8b   : > { %p2135_p2 = scmp.lt.u32.totalorder %s2133_s15, %s2128_s6  ;;  %p2137_p1 = scmp.lt.u32.totalorder %s2128_s6, %s2486_s25 }
  0x8c   : > { %p2131_p10 = pnand %p2129_p7, %p2758_p0 }
  0x8d   : > { %p2136_p6 = por %p2135_p2, %p2134_p13 }
  0x8e   : > { %p2132_p11 = pneg %p2131_p10 }
  0x8f   : > { %p2138_p4 = por %p2137_p1, %p2136_p6 }
  0x91   : > { %p2139_p5 = pnand %p2138_p4, %p2132_p11 }
  0x93   : > { %2142 = shalt.err (!%p2139_p5)
}
  0x94   : > { %s2143_s8 = scalar_lea.vmem %s2517_s3, 2048  ;;  %p2759_p9 = pmov %p2758_p0 }
  0x95   : > { %p2144_p3 = scmp.ne.s32.totalorder %s2517_s3, %s2143_s8  ;;  %s2286_s24 = smov [#allocation12]  }
  0x96   : > { %s2148_s20 = sshll.u32 %s2286_s24, 4  ;;  %s2149_s20 = int_to_ptr.vmem [resolvable:$false] %s2148_s20 }
  0x97   : > { %p2146_p8 = pnand %p2144_p3, %p2759_p9  ;;  %s2150_s22 = scalar_lea.vmem %s2149_s20, 4096 }
  0x98   : > { %p2151_p0 = scmp.lt.s32.totalorder %s2517_s3, %s2149_s20  ;;  %p2152_p10 = scmp.lt.s32.totalorder %s2150_s22, %s2143_s8 }
  0x99   : > { %p2147_p7 = pneg %p2146_p8 }
  0x9a   : > { %p2153_p13 = por %p2152_p10, %p2151_p0 }
  0x9c   : > { %p2154_p2 = pnand %p2153_p13, %p2147_p7 }
  0x9e   : > { %2157 = shalt.err (!%p2154_p2)
}
  0x9f   : > { %1932 = dma.hbm_to_vmem [thread:$0]  (!%p2757_p12), %s2486_s25, 2048, %s2517_s3, %s2450_s19, %s2282_s23, %s2282_s23, %s2283_s21  }
  0xa0   : > { %p2760_p11 = scmp.ne.s32.totalorder %s2744_s13, 0 }
  0xa1   : > { %p2761_p6 = scmp.eq.s32.totalorder (!%p2760_p11), %s2368_s11, 0 }
  0xa2   : > { %386 = sbr.rel (%p2760_p11) target bundleno = 1204 (0x4b4), region = 48 }
  0xa9   : > { %2235 = dma.done.wait (%p2761_p6), [#allocation5], 2048   ;;  %p2762_p1 = pmov %p2761_p6 }
  0xab   : > { %2237 = vsyncadd (%p2762_p1), [#allocation5], 4294965248  ;;  %p2763_p4 = pmov %p2762_p1 }
  0xac   : > { %p2764_p5 = pmov %p2762_p1 }
  0xad   : > { %2239 = dma.done.wait (%p2763_p4), [#allocation8], 1088  }
  0xae   : > { %2241 = vsyncadd (%p2764_p5), [#allocation8], 4294966208  ;;  %s405_s18 = sand.u32 1, %s2368_s11   ;;  %s407_s3 = sand.u32 1, %s2260_s28  }
  0xaf   : > { %s1489_s19 = sshll.u32 %s407_s3, 7  ;;  %s406_s13 = scalar_lea.sflag [#allocation11], %s405_s18 }
  0xb0   : > { %s2577_s23 = scalar_lea.vmem [#allocation10], %s1489_s19  ;;  %p2765_p12 = scmp.ne.s32.totalorder %s2743_s12, 0 }
  0xb2   : > { %2243 = dma.done.wait (%p2765_p12), %s406_s13, 4096  }
  0xb3   : > { %2245 = vsyncadd (%p2765_p12), %s406_s13, 4294963200  ;;  %p465_p3 = scmp.lt.s32.totalorder %s2268_s30, 4  ;;  %s2766_s26 = sld [smem:[#allocation26_spill]] }
  0xb4   : > { %s2767_s6 = sld [smem:[#allocation27_spill]]  ;;  %s2595_s29 = scalar_lea.vmem [#allocation12], %s1489_s19 }
  0xb5   : > { %s2585_s21 = scalar_select %p465_p3, %s2268_s30, 4 }
  0xb6   : > { %p1491_p9 = scmp.ne.s32.totalorder %s2268_s30, 0 }
  0xb7   : > { %v477_v0 = vld [vmem:[#allocation4] sm:$0xff] (!%p1491_p9)  ;;  %v478_v1 = vld [vmem:[#allocation4 + $0x8] sm:$0xff] (!%p1491_p9)  ;;  %v479_v2 = vld [vmem:[#allocation4 + $0x10] sm:$0xff] (!%p1491_p9) }
  0xb8   : > { %476 = sbr.rel (%p1491_p9) target bundleno = 192 (0xc0), region = 72  ;;  %494 = vst [vmem:[#allocation2] sm:$0xff] (!%p1491_p9), %v477_v0  ;;  %495 = vst [vmem:[#allocation2 + $0x8] sm:$0xff] (!%p1491_p9), %v478_v1  ;;  %v480_v3 = vld [vmem:[#allocation4 + $0x18] sm:$0xff] (!%p1491_p9)  ;;  %v481_v4 = vld [vmem:[#allocation4 + $0x20] sm:$0xff] (!%p1491_p9) }
  0xb9   : > { %s467_s14 = scalar_lea.vmem %s2766_s26, %s2585_s21  ;;  %496 = vst [vmem:[#allocation2 + $0x10] sm:$0xff] (!%p1491_p9), %v479_v2  ;;  %v482_v5 = vld [vmem:[#allocation4 + $0x28] sm:$0xff] (!%p1491_p9)  ;;  %497 = vst [vmem:[#allocation2 + $0x18] sm:$0xff] (!%p1491_p9), %v480_v3  ;;  %v483_v6 = vld [vmem:[#allocation4 + $0x30] sm:$0xff] (!%p1491_p9) }
  0xba   : > { %s470_s7 = scalar_lea.vmem %s2767_s6, %s2585_s21  ;;  %498 = vst [vmem:[#allocation2 + $0x20] sm:$0xff] (!%p1491_p9), %v481_v4  ;;  %499 = vst [vmem:[#allocation2 + $0x28] sm:$0xff] (!%p1491_p9), %v482_v5  ;;  %v484_v7 = vld [vmem:[#allocation4 + $0x38] sm:$0xff] (!%p1491_p9)  ;;  %v485_v8 = vld [vmem:[#allocation4 + $0x40] sm:$0xff] (!%p1491_p9) }
  0xbb   : > { %500 = vst [vmem:[#allocation2 + $0x30] sm:$0xff] (!%p1491_p9), %v483_v6  ;;  %501 = vst [vmem:[#allocation2 + $0x38] sm:$0xff] (!%p1491_p9), %v484_v7  ;;  %v486_v9 = vld [vmem:[#allocation4 + $0x48] sm:$0xff] (!%p1491_p9)  ;;  %v487_v10 = vld [vmem:[#allocation4 + $0x50] sm:$0xff] (!%p1491_p9) }
  0xbc   : > { %502 = vst [vmem:[#allocation2 + $0x40] sm:$0xff] (!%p1491_p9), %v485_v8  ;;  %v488_v11 = vld [vmem:[#allocation4 + $0x58] sm:$0xff] (!%p1491_p9)  ;;  %503 = vst [vmem:[#allocation2 + $0x48] sm:$0xff] (!%p1491_p9), %v486_v9  ;;  %v489_v12 = vld [vmem:[#allocation4 + $0x60] sm:$0xff] (!%p1491_p9) }
  0xbd   : > { %504 = vst [vmem:[#allocation2 + $0x50] sm:$0xff] (!%p1491_p9), %v487_v10  ;;  %505 = vst [vmem:[#allocation2 + $0x58] sm:$0xff] (!%p1491_p9), %v488_v11  ;;  %v490_v13 = vld [vmem:[#allocation4 + $0x68] sm:$0xff] (!%p1491_p9)  ;;  %v491_v14 = vld [vmem:[#allocation4 + $0x70] sm:$0xff] (!%p1491_p9) }
  0xbe   : > { %506 = vst [vmem:[#allocation2 + $0x60] sm:$0xff] (!%p1491_p9), %v489_v12  ;;  %507 = vst [vmem:[#allocation2 + $0x68] sm:$0xff] (!%p1491_p9), %v490_v13  ;;  %v492_v15 = vld [vmem:[#allocation4 + $0x78] sm:$0xff] (!%p1491_p9) }
  0xbf   : > { %508 = vst [vmem:[#allocation2 + $0x70] sm:$0xff] %v491_v14  ;;  %509 = vst [vmem:[#allocation2 + $0x78] sm:$0xff] %v492_v15 }
  0xc0 PF: > { %v511_v16 = vld [vmem:[#allocation2] sm:$0xff]  ;;  %v512_v17 = vld [vmem:[#allocation2 + $0x8] sm:$0xff]  ;;  %v789_v37 = vld [vmem:[%s2577_s23 + $0x10] sm:$0xff]  ;;  %p1171_p8 = scmp.eq.s32.totalorder %s2268_s30, 4 }
  0xc1   : > { %v513_v18 = vld [vmem:[#allocation2 + $0x10] sm:$0xff]  ;;  %v527_v19 = vpack.c.bf16 %v512_v17, %v511_v16  ;;  %v514_v20 = vld [vmem:[#allocation2 + $0x18] sm:$0xff]  ;;  %v2006_v27 = vld [vmem:[#allocation7] sm:$0xff]   ;;  %vm2288_vm0 = vmmov (%p1171_p8), 0  }
  0xc2   : > { %v528_v21 = vpack.c.bf16 %v514_v20, %v513_v18  ;;  %v515_v22 = vld [vmem:[#allocation2 + $0x20] sm:$0xff]  ;;  %v516_v23 = vld [vmem:[#allocation2 + $0x28] sm:$0xff]  ;;  %1625 = vmatprep.mubr.bf16.mxu0 %v2006_v27  ;;  %v793_v46 = vld [vmem:[%s2577_s23 + $0x30] sm:$0xff] }
  0xc3   : > { %1609 = vmatprep.subr.bf16.mxu0 %v527_v19  ;;  %v517_v24 = vld [vmem:[#allocation2 + $0x30] sm:$0xff]  ;;  %v529_v25 = vpack.c.bf16 %v516_v23, %v515_v22  ;;  %v518_v26 = vld [vmem:[#allocation2 + $0x38] sm:$0xff]  ;;  %v787_v33 = vld [vmem:[%s2577_s23] sm:$0xff] }
  0xc4   : > { %1610 = vmatpush3.bf16.msra.mxu0 %v527_v19  ;;  %v530_v28 = vpack.c.bf16 %v518_v26, %v517_v24  ;;  %v519_v29 = vld [vmem:[#allocation2 + $0x40] sm:$0xff]  ;;  %v520_v30 = vld [vmem:[#allocation2 + $0x48] sm:$0xff]  ;;  %v797_v56 = vld [vmem:[%s2577_s23 + $0x50] sm:$0xff] }
  0xc5   : > { %1611 = vmatprep.subr.bf16.mxu0 %v528_v21  ;;  %v531_v31 = vpack.c.bf16 %v520_v30, %v519_v29  ;;  %v521_v32 = vld [vmem:[#allocation2 + $0x50] sm:$0xff]  ;;  %v522_v35 = vld [vmem:[#allocation2 + $0x58] sm:$0xff]  ;;  %v791_v40 = vld [vmem:[%s2577_s23 + $0x20] sm:$0xff] }
  0xc6   : > { %v788_v34 = vld [vmem:[%s2577_s23 + $0x8] sm:$0xff]  ;;  %v790_v38 = vld [vmem:[%s2577_s23 + $0x18] sm:$0xff]  ;;  %v532_v42 = vpack.c.bf16 %v522_v35, %v521_v32  ;;  %v795_v52 = vld [vmem:[%s2577_s23 + $0x40] sm:$0xff] }
  0xc7   : > { %v1788_v36 = vpack.c.bf16 %v788_v34, %v787_v33  ;;  %v1792_v39 = vpack.c.bf16 %v790_v38, %v789_v37  ;;  %v792_v41 = vld [vmem:[%s2577_s23 + $0x28] sm:$0xff]  ;;  %v523_v43 = vld [vmem:[#allocation2 + $0x60] sm:$0xff]  ;;  %v526_v50 = vld [vmem:[#allocation2 + $0x78] sm:$0xff] }
  0xc8   : > { %1612 = vmatpush3.bf16.msra.mxu0 %v528_v21  ;;  %v524_v44 = vld [vmem:[#allocation2 + $0x68] sm:$0xff]  ;;  %v1796_v45 = vpack.c.bf16 %v792_v41, %v791_v40  ;;  %v794_v47 = vld [vmem:[%s2577_s23 + $0x38] sm:$0xff]  ;;  %v525_v49 = vld [vmem:[#allocation2 + $0x70] sm:$0xff] }
  0xc9   : > { %1613 = vmatprep.subr.bf16.mxu0 %v529_v25  ;;  %1789 = vmatprep.subr.bf16.mxu1 %v1788_v36  ;;  %v533_v48 = vpack.c.bf16 %v524_v44, %v523_v43  ;;  %v1800_v51 = vpack.c.bf16 %v794_v47, %v793_v46  ;;  %v796_v53 = vld [vmem:[%s2577_s23 + $0x48] sm:$0xff]  ;;  %v534_v54 = vpack.c.bf16 %v526_v50, %v525_v49  ;;  %v798_v57 = vld [vmem:[%s2577_s23 + $0x58] sm:$0xff]  ;;  %v799_v60 = vld [vmem:[%s2577_s23 + $0x60] sm:$0xff] }
  0xca   : > { %1791 = vmatpush3.bf16.msra.mxu1 %v1788_v36  ;;  %v1804_v55 = vpack.c.bf16 %v796_v53, %v795_v52  ;;  %v1808_v58 = vpack.c.bf16 %v798_v57, %v797_v56  ;;  %v2007_v59 = vld [vmem:[#allocation7 + $0x8] sm:$0xff]   ;;  %v2008_v62 = vld [vmem:[#allocation7 + $0x10] sm:$0xff]   ;;  %v2009_v0 = vld [vmem:[#allocation7 + $0x18] sm:$0xff]  }
  0xcb   : > { %1793 = vmatprep.subr.bf16.mxu1 %v1792_v39  ;;  %v800_v61 = vld [vmem:[%s2577_s23 + $0x68] sm:$0xff]  ;;  %v2010_v1 = vld [vmem:[#allocation7 + $0x20] sm:$0xff]   ;;  %v2013_v4 = vld [vmem:[#allocation7 + $0x38] sm:$0xff]  }
  0xcc   : > { %1614 = vmatpush3.bf16.msra.mxu0 %v529_v25  ;;  %v1812_v63 = vpack.c.bf16 %v800_v61, %v799_v60  ;;  %v2011_v2 = vld [vmem:[#allocation7 + $0x28] sm:$0xff]   ;;  %v2012_v3 = vld [vmem:[#allocation7 + $0x30] sm:$0xff]   ;;  %v802_v6 = vld [vmem:[%s2577_s23 + $0x78] sm:$0xff] }
  0xcd   : > { %1615 = vmatprep.subr.bf16.mxu0 %v530_v28  ;;  %v801_v5 = vld [vmem:[%s2577_s23 + $0x70] sm:$0xff]  ;;  %v971_v8 = vld [vmem:[%s2595_s29] sm:$0xff]  ;;  %v972_v9 = vld [vmem:[%s2595_s29 + $0x8] sm:$0xff] }
  0xce   : > { %1795 = vmatpush3.bf16.msra.mxu1 %v1792_v39  ;;  %v1816_v7 = vpack.c.bf16 %v802_v6, %v801_v5  ;;  %v973_v10 = vld [vmem:[%s2595_s29 + $0x10] sm:$0xff]  ;;  %v1820_v11 = vpack.c.bf16 %v972_v9, %v971_v8  ;;  %v974_v12 = vld [vmem:[%s2595_s29 + $0x18] sm:$0xff]  ;;  %v975_v14 = vld [vmem:[%s2595_s29 + $0x20] sm:$0xff] }
  0xcf   : > { %1797 = vmatprep.subr.bf16.mxu1 %v1796_v45  ;;  %v1824_v13 = vpack.c.bf16 %v974_v12, %v973_v10  ;;  %v976_v15 = vld [vmem:[%s2595_s29 + $0x28] sm:$0xff]  ;;  %v977_v17 = vld [vmem:[%s2595_s29 + $0x30] sm:$0xff]  ;;  %v978_v18 = vld [vmem:[%s2595_s29 + $0x38] sm:$0xff] }
  0xd0   : > { %1616 = vmatpush3.bf16.msra.mxu0 %v530_v28  ;;  %v1828_v16 = vpack.c.bf16 %v976_v15, %v975_v14  ;;  %v1832_v19 = vpack.c.bf16 %v978_v18, %v977_v17  ;;  %v979_v20 = vld [vmem:[%s2595_s29 + $0x40] sm:$0xff]  ;;  %v980_v21 = vld [vmem:[%s2595_s29 + $0x48] sm:$0xff]  ;;  %v981_v23 = vld [vmem:[%s2595_s29 + $0x50] sm:$0xff] }
  0xd1   : > { %1617 = vmatprep.subr.bf16.mxu0 %v531_v31  ;;  %v1836_v22 = vpack.c.bf16 %v980_v21, %v979_v20  ;;  %v982_v24 = vld [vmem:[%s2595_s29 + $0x58] sm:$0xff]  ;;  %v983_v26 = vld [vmem:[%s2595_s29 + $0x60] sm:$0xff]  ;;  %v984_v27 = vld [vmem:[%s2595_s29 + $0x68] sm:$0xff] }
  0xd2   : > { %1799 = vmatpush3.bf16.msra.mxu1 %v1796_v45  ;;  %v1840_v25 = vpack.c.bf16 %v982_v24, %v981_v23  ;;  %v1844_v28 = vpack.c.bf16 %v984_v27, %v983_v26  ;;  %v985_v45 = vld [vmem:[%s2595_s29 + $0x70] sm:$0xff]  ;;  %v986_v46 = vld [vmem:[%s2595_s29 + $0x78] sm:$0xff] }
  0xd3   : > { %1801 = vmatprep.subr.bf16.mxu1 %v1800_v51  ;;  %v1848_v47 = vpack.c.bf16 %v986_v46, %v985_v45 }
  0xd4   : > { %1618 = vmatpush3.bf16.msra.mxu0 %v531_v31 }
  0xd5   : > { %1619 = vmatprep.subr.bf16.mxu0 %v532_v42 }
  0xd6   : > { %1803 = vmatpush3.bf16.msra.mxu1 %v1800_v51 }
  0xd7   : > { %1805 = vmatprep.subr.bf16.mxu1 %v1804_v55 }
  0xd8   : > { %1620 = vmatpush3.bf16.msra.mxu0 %v532_v42 }
  0xd9   : > { %1621 = vmatprep.subr.bf16.mxu0 %v533_v48 }
  0xda   : > { %1807 = vmatpush3.bf16.msra.mxu1 %v1804_v55 }
  0xdb   : > { %1809 = vmatprep.subr.bf16.mxu1 %v1808_v58 }
  0xdc   : > { %1622 = vmatpush3.bf16.msra.mxu0 %v533_v48  ;;  %v1500_v48 = vld [vmem:[%s467_s14] ss:$0 sm:$0xff] }
  0xdd   : > { %1623 = vmatprep.subr.bf16.mxu0 %v534_v54 }
  0xde   : > { %1811 = vmatpush3.bf16.msra.mxu1 %v1808_v58 }
  0xdf   : > { %1813 = vmatprep.subr.bf16.mxu1 %v1812_v63 }
  0xe0   : > { %1624 = vmatpush3.bf16.msra.mxu0 %v534_v54 }
  0xe1   : > { %1821 = vmatprep.subr.bf16.mxu0 %v1820_v11 }
  0xe2   : > { %1815 = vmatpush3.bf16.msra.mxu1 %v1812_v63 }
  0xe3   : > { %1626 = vmatmul.mubr.bf16.vlgmr.msra.gmra.mrb[0].mxu0 %v2007_v59  ;;  %1817 = vmatprep.subr.bf16.mxu1 %v1816_v7 }
  0xe4   : > { %1629 = vmatprep.mubr.bf16.mxu0 %v2008_v62  ;;  %1823 = vmatpush3.bf16.msra.mxu0 %v1820_v11 }
  0xe5   : > { %1825 = vmatprep.subr.bf16.mxu0 %v1824_v13 }
  0xe6   : > { %1819 = vmatpush3.bf16.msra.mxu1 %v1816_v7 }
  0xe7   : > { %1876 = vmatprep.subr.bf16.mxu1 %v1820_v11 }
  0xe8   : > { %1827 = vmatpush3.bf16.msra.mxu0 %v1824_v13 }
  0xe9   : > { %1829 = vmatprep.subr.bf16.mxu0 %v1828_v16 }
  0xeb   : > { %1630 = vmatmul.mubr.bf16.gmra.mrb[4].mxu0 %v2009_v0 }
  0xec   : > { %1633 = vmatprep.mubr.bf16.mxu0 %v2010_v1  ;;  %1831 = vmatpush3.bf16.msra.mxu0 %v1828_v16 }
  0xed   : > { %1833 = vmatprep.subr.bf16.mxu0 %v1832_v19 }
  0xf0   : > { %1835 = vmatpush3.bf16.msra.mxu0 %v1832_v19 }
  0xf1   : > { %1837 = vmatprep.subr.bf16.mxu0 %v1836_v22 }
  0xf3   : > { %1634 = vmatmul.mubr.bf16.gmra.mrb[8].mxu0 %v2011_v2 }
  0xf4   : > { %1637 = vmatprep.mubr.bf16.mxu0 %v2012_v3  ;;  %1839 = vmatpush3.bf16.msra.mxu0 %v1836_v22 }
  0xf5   : > { %1841 = vmatprep.subr.bf16.mxu0 %v1840_v25 }
  0xf8   : > { %1843 = vmatpush3.bf16.msra.mxu0 %v1840_v25 }
  0xf9   : > { %1845 = vmatprep.subr.bf16.mxu0 %v1844_v28 }
  0xfb   : > { %1638 = vmatmul.mubr.bf16.gmra.mrb[12].mxu0 %v2013_v4 }
  0xfc   : > { %1847 = vmatpush3.bf16.msra.mxu0 %v1844_v28 }
  0xfd   : > { %1849 = vmatprep.subr.bf16.mxu0 %v1848_v47 }
 0x100   : > { %1851 = vmatpush3.bf16.msra.mxu0 %v1848_v47 }
 0x1b6   : > { %v1627_v29 = vpop.f32.mrb[0].mxu0 }
 0x1b7   : > { %v633_v30 = vpop.f32.mrb[1].mxu0 }
 0x1b8   : > { %v1628_v31 = vpop.f32.mrb[2].mxu0  ;;  %1673 = vmatprep.mubr.f32.mxu1 %v633_v30 }
 0x1b9   : > { %v636_v32 = vpop.f32.mrb[3].mxu0 }
 0x1ba   : > { %1674 = vmatmul.mubr.f32.vlgmr.msra.gmra.mrb[0].mxu1 %v636_v32 }
 0x1bb   : > { %1676 = vmatprep.mubr.f32.mxu1 %v1627_v29  ;;  %1884 = vmatpush3.bf16.msra.mxu1 %v1820_v11 }
 0x1bc   : > { %1877 = vmatprep.subr.bf16.mxu1 %v1824_v13 }
 0x1be   : > { %v1631_v33 = vpop.f32.mrb[4].mxu0  ;;  %1677 = vmatmul.mubr.f32.gmra.mrb[2].mxu1 %v1628_v31 }
 0x1bf   : > { %v649_v34 = vpop.f32.mrb[5].mxu0  ;;  %1885 = vmatpush3.bf16.msra.mxu1 %v1824_v13 }
 0x1c0   : > { %v1632_v35 = vpop.f32.mrb[6].mxu0  ;;  %1679 = vmatprep.mubr.f32.mxu1 %v649_v34  ;;  %1878 = vmatprep.subr.bf16.mxu1 %v1828_v16 }
 0x1c1   : > { %v652_v36 = vpop.f32.mrb[7].mxu0 }
 0x1c2   : > { %1680 = vmatmul.mubr.f32.gmra.mrb[4].mxu1 %v652_v36 }
 0x1c3   : > { %1682 = vmatprep.mubr.f32.mxu1 %v1631_v33  ;;  %1886 = vmatpush3.bf16.msra.mxu1 %v1828_v16  ;;  %v1501_v33 = vld [vmem:[%s470_s7] ss:$0 sm:$0xff] }
 0x1c4   : > { %1879 = vmatprep.subr.bf16.mxu1 %v1832_v19 }
 0x1c6   : > { %v1635_v37 = vpop.f32.mrb[8].mxu0  ;;  %1683 = vmatmul.mubr.f32.gmra.mrb[6].mxu1 %v1632_v35 }
 0x1c7   : > { %v665_v38 = vpop.f32.mrb[9].mxu0  ;;  %1887 = vmatpush3.bf16.msra.mxu1 %v1832_v19 }
 0x1c8   : > { %v1636_v39 = vpop.f32.mrb[10].mxu0  ;;  %1685 = vmatprep.mubr.f32.mxu1 %v665_v38  ;;  %1880 = vmatprep.subr.bf16.mxu1 %v1836_v22 }
 0x1c9   : > { %v668_v40 = vpop.f32.mrb[11].mxu0 }
 0x1ca   : > { %1686 = vmatmul.mubr.f32.gmra.mrb[8].mxu1 %v668_v40 }
 0x1cb   : > { %1688 = vmatprep.mubr.f32.mxu1 %v1635_v37  ;;  %1888 = vmatpush3.bf16.msra.mxu1 %v1836_v22 }
 0x1cc   : > { %1881 = vmatprep.subr.bf16.mxu1 %v1840_v25 }
 0x1ce   : > { %v1639_v41 = vpop.f32.mrb[12].mxu0  ;;  %1689 = vmatmul.mubr.f32.gmra.mrb[10].mxu1 %v1636_v39 }
 0x1cf   : > { %v681_v42 = vpop.f32.mrb[13].mxu0  ;;  %1889 = vmatpush3.bf16.msra.mxu1 %v1840_v25 }
 0x1d0   : > { %v1640_v43 = vpop.f32.mrb[14].mxu0  ;;  %1691 = vmatprep.mubr.f32.mxu1 %v681_v42  ;;  %1882 = vmatprep.subr.bf16.mxu1 %v1844_v28 }
 0x1d1   : > { %v684_v44 = vpop.f32.mrb[15].mxu0 }
 0x1d2   : > { %1692 = vmatmul.mubr.f32.gmra.mrb[12].mxu1 %v684_v44 }
 0x1d3   : > { %1694 = vmatprep.mubr.f32.mxu1 %v1639_v41  ;;  %1890 = vmatpush3.bf16.msra.mxu1 %v1844_v28 }
 0x1d4   : > { %1883 = vmatprep.subr.bf16.mxu1 %v1848_v47 }
 0x1d6   : > { %1695 = vmatmul.mubr.f32.gmra.mrb[14].mxu1 %v1640_v43 }
 0x1d7   : > { %1891 = vmatpush3.bf16.msra.mxu1 %v1848_v47 }
 0x28d   : > { %v1675_v49 = vpop.f32.mrb[0].mxu1 }
 0x28e   : > { %v882_v50 = vadd.f32 %v1675_v49, %v1500_v48  ;;  %v876_v51 = vpop.f32.mrb[1].mxu1 }
 0x28f   : > { %v877_v52 = vadd.f32 %v1500_v48, %v876_v51 }
 0x290   : > { %v956_v55 = vmax.f32 %v882_v50, 0.0 }
 0x291   : > { %v955_v53 = vmax.f32 %v877_v52, 0.0  ;;  %v1678_v54 = vpop.f32.mrb[2].mxu1 }
 0x292   : > { %v892_v56 = vadd.f32 %v1678_v54, %v1500_v48  ;;  %v886_v57 = vpop.f32.mrb[3].mxu1 }
 0x293   : > { %v887_v58 = vadd.f32 %v1500_v48, %v886_v57  ;;  %1729 = vmatprep.mubr.f32.mxu0 %v955_v53 }
 0x294   : > { %1730 = vmatmul.mubr.f32.vlgmr.msra.gmra.mrb[16].mxu0 %v956_v55  ;;  %v958_v61 = vmax.f32 %v892_v56, 0.0 }
 0x295   : > { %v957_v59 = vmax.f32 %v887_v58, 0.0  ;;  %v1681_v60 = vpop.f32.mrb[4].mxu1 }
 0x296   : > { %v902_v62 = vadd.f32 %v1681_v60, %v1500_v48  ;;  %v896_v63 = vpop.f32.mrb[5].mxu1 }
 0x297   : > { %v897_v0 = vadd.f32 %v1500_v48, %v896_v63  ;;  %1732 = vmatprep.mubr.f32.mxu0 %v957_v59 }
 0x298   : > { %1733 = vmatmul.mubr.f32.gmra.mrb[18].mxu0 %v958_v61  ;;  %v960_v3 = vmax.f32 %v902_v62, 0.0 }
 0x299   : > { %v959_v1 = vmax.f32 %v897_v0, 0.0  ;;  %v1684_v2 = vpop.f32.mrb[6].mxu1 }
 0x29a   : > { %v912_v4 = vadd.f32 %v1684_v2, %v1500_v48  ;;  %v906_v5 = vpop.f32.mrb[7].mxu1 }
 0x29b   : > { %v907_v6 = vadd.f32 %v1500_v48, %v906_v5  ;;  %1735 = vmatprep.mubr.f32.mxu0 %v959_v1 }
 0x29c   : > { %1736 = vmatmul.mubr.f32.gmra.mrb[20].mxu0 %v960_v3  ;;  %v962_v9 = vmax.f32 %v912_v4, 0.0 }
 0x29d   : > { %v961_v7 = vmax.f32 %v907_v6, 0.0  ;;  %v1687_v8 = vpop.f32.mrb[8].mxu1 }
 0x29e   : > { %v922_v10 = vadd.f32 %v1687_v8, %v1500_v48  ;;  %v916_v11 = vpop.f32.mrb[9].mxu1 }
 0x29f   : > { %v917_v12 = vadd.f32 %v1500_v48, %v916_v11  ;;  %1738 = vmatprep.mubr.f32.mxu0 %v961_v7 }
 0x2a0   : > { %1739 = vmatmul.mubr.f32.gmra.mrb[22].mxu0 %v962_v9  ;;  %v964_v15 = vmax.f32 %v922_v10, 0.0 }
 0x2a1   : > { %v963_v13 = vmax.f32 %v917_v12, 0.0  ;;  %v1690_v14 = vpop.f32.mrb[10].mxu1 }
 0x2a2   : > { %v932_v16 = vadd.f32 %v1690_v14, %v1500_v48  ;;  %v926_v17 = vpop.f32.mrb[11].mxu1 }
 0x2a3   : > { %v927_v18 = vadd.f32 %v1500_v48, %v926_v17  ;;  %1741 = vmatprep.mubr.f32.mxu1 %v963_v13 }
 0x2a4   : > { %1742 = vmatmul.mubr.f32.vlgmr.msra.gmra.mrb[16].mxu1 %v964_v15  ;;  %v966_v21 = vmax.f32 %v932_v16, 0.0 }
 0x2a5   : > { %v965_v19 = vmax.f32 %v927_v18, 0.0  ;;  %v1693_v20 = vpop.f32.mrb[12].mxu1 }
 0x2a6   : > { %v942_v22 = vadd.f32 %v1693_v20, %v1500_v48  ;;  %v936_v23 = vpop.f32.mrb[13].mxu1 }
 0x2a7   : > { %v937_v24 = vadd.f32 %v1500_v48, %v936_v23  ;;  %1744 = vmatprep.mubr.f32.mxu1 %v965_v19 }
 0x2a8   : > { %1745 = vmatmul.mubr.f32.gmra.mrb[18].mxu1 %v966_v21  ;;  %v968_v27 = vmax.f32 %v942_v22, 0.0 }
 0x2a9   : > { %v967_v25 = vmax.f32 %v937_v24, 0.0  ;;  %v1696_v26 = vpop.f32.mrb[14].mxu1  ;;  %v2287_v24 = vmov (%p1171_p8), 0.0|0.0  }
 0x2aa   : > { %v952_v28 = vadd.f32 %v1696_v26, %v1500_v48  ;;  %v946_v29 = vpop.f32.mrb[15].mxu1  ;;  %1852 = vmatprep.subr.bf16.mxu0 (%p1171_p8), %v2287_v24  ;;  %v2289_v26 = vmov (%p1171_p8), 0.0  }
 0x2ab   : > { %v947_v30 = vadd.f32 %v1500_v48, %v946_v29  ;;  %1747 = vmatprep.mubr.f32.mxu1 %v967_v25  ;;  %1785 = vmatprep.mubr.msk.f32.mxu0 (%p1171_p8), %vm2288_vm0, %v2289_v26 }
 0x2ac   : > { %1748 = vmatmul.mubr.f32.gmra.mrb[20].mxu1 %v968_v27  ;;  %v970_v32 = vmax.f32 %v952_v28, 0.0 }
 0x2ad   : > { %v969_v31 = vmax.f32 %v947_v30, 0.0 }
 0x2af   : > { %1750 = vmatprep.mubr.f32.mxu1 %v969_v31 }
 0x2b0   : > { %1751 = vmatmul.mubr.f32.gmra.mrb[22].mxu1 %v970_v32 }
 0x367   : > { %v1731_v34 = vpop.f32.mrb[16].mxu0 }
 0x368   : > { %v1066_v35 = vadd.f32 %v1731_v34, %v1501_v33  ;;  %v1060_v36 = vpop.f32.mrb[17].mxu0 }
 0x369   : > { %v1061_v37 = vadd.f32 %v1501_v33, %v1060_v36 }
 0x36a   : > { %v1140_v38 = vmax.f32 %v1066_v35, 0.0 }
 0x36b   : > { %v1139_v39 = vmax.f32 %v1061_v37, 0.0  ;;  %v1734_v40 = vpop.f32.mrb[18].mxu0 }
 0x36c   : > { %1156 = vst [vmem:[#allocation2 + $0x8] sm:$0xff] %v1140_v38  ;;  %v1076_v41 = vadd.f32 %v1734_v40, %v1501_v33  ;;  %v1070_v42 = vpop.f32.mrb[19].mxu0 }
 0x36d   : > { %1155 = vst [vmem:[#allocation2] sm:$0xff] %v1139_v39  ;;  %v1071_v43 = vadd.f32 %v1501_v33, %v1070_v42 }
 0x36e   : > { %v1142_v44 = vmax.f32 %v1076_v41, 0.0 }
 0x36f   : > { %v1141_v45 = vmax.f32 %v1071_v43, 0.0  ;;  %v1737_v46 = vpop.f32.mrb[20].mxu0 }
 0x370   : > { %1158 = vst [vmem:[#allocation2 + $0x18] sm:$0xff] %v1142_v44  ;;  %v1086_v47 = vadd.f32 %v1737_v46, %v1501_v33  ;;  %v1080_v48 = vpop.f32.mrb[21].mxu0  ;;  %v1208_v44 = vld [vmem:[#allocation9] sm:$0xf] (%p1171_p8) }
 0x371   : > { %1157 = vst [vmem:[#allocation2 + $0x10] sm:$0xff] %v1141_v45  ;;  %v1081_v49 = vadd.f32 %v1501_v33, %v1080_v48  ;;  %v1209_v45 = vunpack.c.l.bf16 (%p1171_p8), %v1208_v44 }
 0x372   : > { %v1144_v50 = vmax.f32 %v1086_v47, 0.0 }
 0x373   : > { %v1143_v51 = vmax.f32 %v1081_v49, 0.0  ;;  %v1740_v52 = vpop.f32.mrb[22].mxu0  ;;  %v1177_v19 = vld [vmem:[#allocation2 + $0x8] sm:$0xff] (%p1171_p8) }
 0x374   : > { %1160 = vst [vmem:[#allocation2 + $0x28] sm:$0xff] %v1144_v50  ;;  %v1096_v53 = vadd.f32 %v1740_v52, %v1501_v33  ;;  %v1090_v54 = vpop.f32.mrb[23].mxu0  ;;  %v1176_v18 = vld [vmem:[#allocation2] sm:$0xff] (%p1171_p8)  ;;  %1193 = vst [vmem:[#allocation14 + $0x8] sm:$0xff] (%p1171_p8), %v1177_v19 }
 0x375   : > { %1159 = vst [vmem:[#allocation2 + $0x20] sm:$0xff] %v1143_v51  ;;  %v1091_v55 = vadd.f32 %v1501_v33, %v1090_v54  ;;  %1192 = vst [vmem:[#allocation14] sm:$0xff] (%p1171_p8), %v1176_v18  ;;  %v1853_v25 = vpack.c.bf16 (%p1171_p8), %v1177_v19, %v1176_v18 }
 0x376   : > { %v1146_v56 = vmax.f32 %v1096_v53, 0.0 }
 0x377   : > { %v1145_v57 = vmax.f32 %v1091_v55, 0.0  ;;  %v1743_v58 = vpop.f32.mrb[16].mxu1  ;;  %v1179_v21 = vld [vmem:[#allocation2 + $0x18] sm:$0xff] (%p1171_p8)  ;;  %1854 = vmatpush3.bf16.msra.mxu0 (%p1171_p8), %v1853_v25 }
 0x378   : > { %1162 = vst [vmem:[#allocation2 + $0x38] sm:$0xff] %v1146_v56  ;;  %v1106_v59 = vadd.f32 %v1743_v58, %v1501_v33  ;;  %v1100_v60 = vpop.f32.mrb[17].mxu1  ;;  %v1178_v20 = vld [vmem:[#allocation2 + $0x10] sm:$0xff] (%p1171_p8)  ;;  %1195 = vst [vmem:[#allocation14 + $0x18] sm:$0xff] (%p1171_p8), %v1179_v21  ;;  %1855 = vmatprep.subr.bf16.mxu0 (%p1171_p8), %v2287_v24 }
 0x379   : > { %1161 = vst [vmem:[#allocation2 + $0x30] sm:$0xff] %v1145_v57  ;;  %v1101_v61 = vadd.f32 %v1501_v33, %v1100_v60  ;;  %1194 = vst [vmem:[#allocation14 + $0x10] sm:$0xff] (%p1171_p8), %v1178_v20 }
 0x37a   : > { %v1148_v62 = vmax.f32 %v1106_v59, 0.0 }
 0x37b   : > { %v1147_v63 = vmax.f32 %v1101_v61, 0.0  ;;  %v1746_v0 = vpop.f32.mrb[18].mxu1  ;;  %v1181_v23 = vld [vmem:[#allocation2 + $0x28] sm:$0xff] (%p1171_p8) }
 0x37c   : > { %1164 = vst [vmem:[#allocation2 + $0x48] sm:$0xff] %v1148_v62  ;;  %v1116_v1 = vadd.f32 %v1746_v0, %v1501_v33  ;;  %v1110_v2 = vpop.f32.mrb[19].mxu1  ;;  %v1180_v22 = vld [vmem:[#allocation2 + $0x20] sm:$0xff] (%p1171_p8)  ;;  %1197 = vst [vmem:[#allocation14 + $0x28] sm:$0xff] (%p1171_p8), %v1181_v23 }
 0x37d   : > { %1163 = vst [vmem:[#allocation2 + $0x40] sm:$0xff] %v1147_v63  ;;  %v1111_v3 = vadd.f32 %v1501_v33, %v1110_v2  ;;  %1196 = vst [vmem:[#allocation14 + $0x20] sm:$0xff] (%p1171_p8), %v1180_v22  ;;  %v1859_v38 = vpack.c.bf16 (%p1171_p8), %v1181_v23, %v1180_v22 }
 0x37e   : > { %v1150_v4 = vmax.f32 %v1116_v1, 0.0 }
 0x37f   : > { %v1149_v5 = vmax.f32 %v1111_v3, 0.0  ;;  %v1749_v6 = vpop.f32.mrb[20].mxu1  ;;  %v1183_v28 = vld [vmem:[#allocation2 + $0x38] sm:$0xff] (%p1171_p8) }
 0x380   : > { %1166 = vst [vmem:[#allocation2 + $0x58] sm:$0xff] %v1150_v4  ;;  %v1126_v7 = vadd.f32 %v1749_v6, %v1501_v33  ;;  %v1120_v8 = vpop.f32.mrb[21].mxu1  ;;  %v1182_v27 = vld [vmem:[#allocation2 + $0x30] sm:$0xff] (%p1171_p8)  ;;  %1199 = vst [vmem:[#allocation14 + $0x38] sm:$0xff] (%p1171_p8), %v1183_v28 }
 0x381   : > { %1165 = vst [vmem:[#allocation2 + $0x50] sm:$0xff] %v1149_v5  ;;  %v1121_v9 = vadd.f32 %v1501_v33, %v1120_v8  ;;  %1198 = vst [vmem:[#allocation14 + $0x30] sm:$0xff] (%p1171_p8), %v1182_v27  ;;  %v1862_v39 = vpack.c.bf16 (%p1171_p8), %v1183_v28, %v1182_v27 }
 0x382   : > { %v1152_v10 = vmax.f32 %v1126_v7, 0.0 }
 0x383   : > { %v1151_v11 = vmax.f32 %v1121_v9, 0.0  ;;  %v1752_v12 = vpop.f32.mrb[22].mxu1  ;;  %1175 = sbr.rel (!%p1171_p8) target bundleno = 1143 (0x477), region = 88  ;;  %v1185_v30 = vld [vmem:[#allocation2 + $0x48] sm:$0xff] (%p1171_p8) }
 0x384   : > { %1168 = vst [vmem:[#allocation2 + $0x68] sm:$0xff] %v1152_v10  ;;  %v1136_v13 = vadd.f32 %v1752_v12, %v1501_v33  ;;  %v1130_v14 = vpop.f32.mrb[23].mxu1  ;;  %v1184_v29 = vld [vmem:[#allocation2 + $0x40] sm:$0xff] (%p1171_p8)  ;;  %1201 = vst [vmem:[#allocation14 + $0x48] sm:$0xff] (%p1171_p8), %v1185_v30 }
 0x385   : > { %1167 = vst [vmem:[#allocation2 + $0x60] sm:$0xff] %v1151_v11  ;;  %v1131_v15 = vadd.f32 %v1501_v33, %v1130_v14  ;;  %1200 = vst [vmem:[#allocation14 + $0x40] sm:$0xff] (%p1171_p8), %v1184_v29  ;;  %v1856_v33 = vpack.c.bf16 (%p1171_p8), %v1179_v21, %v1178_v20  ;;  %v1865_v40 = vpack.c.bf16 (%p1171_p8), %v1185_v30, %v1184_v29 }
 0x386   : > { %v1154_v16 = vmax.f32 %v1136_v13, 0.0 }
 0x387   : > { %v1153_v17 = vmax.f32 %v1131_v15, 0.0  ;;  %v1187_v32 = vld [vmem:[#allocation2 + $0x58] sm:$0xff] (%p1171_p8)  ;;  %1857 = vmatpush3.bf16.msra.mxu0 (%p1171_p8), %v1856_v33 }
 0x388   : > { %1170 = vst [vmem:[#allocation2 + $0x78] sm:$0xff] %v1154_v16  ;;  %v1186_v31 = vld [vmem:[#allocation2 + $0x50] sm:$0xff] (%p1171_p8)  ;;  %1203 = vst [vmem:[#allocation14 + $0x58] sm:$0xff] (%p1171_p8), %v1187_v32  ;;  %1858 = vmatprep.subr.bf16.mxu0 (%p1171_p8), %v2287_v24 }
 0x389   : > { %1169 = vst [vmem:[#allocation2 + $0x70] sm:$0xff] %v1153_v17  ;;  %1202 = vst [vmem:[#allocation14 + $0x50] sm:$0xff] (%p1171_p8), %v1186_v31  ;;  %v1868_v41 = vpack.c.bf16 (%p1171_p8), %v1187_v32, %v1186_v31 }
 0x38b   : > { %v1189_v35 = vld [vmem:[#allocation2 + $0x68] sm:$0xff]  ;;  %1860 = vmatpush3.bf16.msra.mxu0 %v1859_v38 }
 0x38c   : > { %v1188_v34 = vld [vmem:[#allocation2 + $0x60] sm:$0xff]  ;;  %1205 = vst [vmem:[#allocation14 + $0x68] sm:$0xff] %v1189_v35  ;;  %1861 = vmatprep.subr.bf16.mxu0 %v2287_v24 }
 0x38d   : > { %1204 = vst [vmem:[#allocation14 + $0x60] sm:$0xff] %v1188_v34  ;;  %v1871_v42 = vpack.c.bf16 %v1189_v35, %v1188_v34 }
 0x38f   : > { %v1191_v37 = vld [vmem:[#allocation2 + $0x78] sm:$0xff]  ;;  %1863 = vmatpush3.bf16.msra.mxu0 %v1862_v39 }
 0x390   : > { %v1190_v36 = vld [vmem:[#allocation2 + $0x70] sm:$0xff]  ;;  %1207 = vst [vmem:[#allocation14 + $0x78] sm:$0xff] %v1191_v37  ;;  %1864 = vmatprep.subr.bf16.mxu0 %v2287_v24 }
 0x391   : > { %1206 = vst [vmem:[#allocation14 + $0x70] sm:$0xff] %v1190_v36  ;;  %v1874_v43 = vpack.c.bf16 %v1191_v37, %v1190_v36 }
 0x393   : > { %1866 = vmatpush3.bf16.msra.mxu0 %v1865_v40 }
 0x394   : > { %1867 = vmatprep.subr.bf16.mxu0 %v2287_v24 }
 0x397   : > { %1869 = vmatpush3.bf16.msra.mxu0 %v1868_v41 }
 0x398   : > { %1870 = vmatprep.subr.bf16.mxu0 %v2287_v24 }
 0x39b   : > { %1872 = vmatpush3.bf16.msra.mxu0 %v1871_v42 }
 0x39c   : > { %1873 = vmatprep.subr.bf16.mxu0 %v2287_v24 }
 0x39f   : > { %1875 = vmatpush3.bf16.msra.mxu0 %v1874_v43 }
 0x3a2   : > { %1786 = vmatmul.mubr.f32.vlgmr.msra.gmra.mrb[0].mxu0 %v1209_v45 }
 0x475   : > { %v1292_v46 = vpop.f32.mrb[0].mxu0 }
 0x476   : > { %1296 = vst [vmem:[#allocation13] sm:$0xff] %v1292_v46  ;;  %v1787_v47 = vpop.f32.mrb[1].mxu0 }
 0x477 PF: > { %p1940_p7 = scmp.eq.s32.totalorder %s2368_s11, 4  ;;  %s2290_s30 = smov [#allocation13]  }
 0x478   : > { %s1304_s20 = sshll.u32 %s2290_s30, 4  ;;  %s2291_s22 = smov [#allocation14]   ;;  %s1305_s20 = int_to_ptr.vmem [resolvable:$true] %s1304_s20 }
 0x479   : > { %s1314_s18 = sshll.u32 %s2291_s22, 4  ;;  %s2158_s3 = scalar_lea.vmem %s1305_s20, 128  ;;  %s2644_s18 = int_to_ptr.vmem [resolvable:$true] %s1314_s18 }
 0x47a   : > { %p2159_p0 = scmp.ne.s32.totalorder %s1305_s20, %s2158_s3  ;;  %p2165_p2 = scmp.lt.s32.totalorder %s1305_s20, %s1305_s20 }
 0x47b   : > { %p2166_p11 = scmp.lt.s32.totalorder %s2158_s3, %s2158_s3 }
 0x47c   : > { %p2160_p10 = pnand %p2159_p0, %p1940_p7 }
 0x47d   : > { %p2167_p6 = por %p2166_p11, %p2165_p2 }
 0x47e   : > { %p2161_p13 = pneg %p2160_p10 }
 0x480   : > { %p2168_p1 = pnand %p2167_p6, %p2161_p13 }
 0x482   : > { %2171 = shalt.err (!%p2168_p1)
}
 0x483   : > { %s2770_s23 = sld [smem:[#allocation28_spill]] }
 0x489   : > { %s2172_s21 = scalar_lea.hbm %s2770_s23, 128 }
 0x48a   : > { %p2173_p4 = scmp.ne.s32.totalorder %s2770_s23, %s2172_s21  ;;  %p2178_p3 = scmp.lt.u32.totalorder %s2172_s21, %s2770_s23 }
 0x48c   : > { %p2174_p5 = pnand %p2173_p4, %p1940_p7 }
 0x48e   : > { %p2175_p12 = pneg %p2174_p5 }
 0x490   : > { %p2180_p9 = pnand %p2178_p3, %p2175_p12 }
 0x492   : > { %2183 = shalt.err (!%p2180_p9)
}
 0x493   : > { %1909 = dma.vmem_to_hbm [thread:$0]  (%p1940_p7), %s1305_s20, 128, %s2770_s23, [#allocation6]  }
 0x494   : > { %s2184_s6 = scalar_lea.vmem %s2644_s18, 2048  ;;  %p2191_p13 = scmp.lt.s32.totalorder %s2644_s18, %s2644_s18 }
 0x495   : > { %p2185_p8 = scmp.ne.s32.totalorder %s2644_s18, %s2184_s6  ;;  %p2192_p2 = scmp.lt.s32.totalorder %s2184_s6, %s2184_s6 }
 0x497   : > { %p2186_p0 = pnand %p2185_p8, %p1940_p7  ;;  %p2193_p11 = por %p2192_p2, %p2191_p13 }
 0x499   : > { %p2187_p10 = pneg %p2186_p0 }
 0x49b   : > { %p2194_p6 = pnand %p2193_p11, %p2187_p10 }
 0x49d   : > { %2197 = shalt.err (!%p2194_p6)
}
 0x49e   : > { %s2771_s12 = sld [smem:[#allocation29_spill]] }
 0x4a4   : > { %s2198_s15 = scalar_lea.hbm %s2771_s12, 2048 }
 0x4a5   : > { %p2199_p1 = scmp.ne.s32.totalorder %s2771_s12, %s2198_s15  ;;  %p2204_p12 = scmp.lt.u32.totalorder %s2198_s15, %s2771_s12 }
 0x4a7   : > { %p2200_p4 = pnand %p2199_p1, %p1940_p7 }
 0x4a9   : > { %p2201_p5 = pneg %p2200_p4 }
 0x4ab   : > { %p2206_p3 = pnand %p2204_p12, %p2201_p5 }
 0x4ad   : > { %2209 = shalt.err (!%p2206_p3)
}
 0x4ae   : > { %s2292_s30 = smov 128   ;;  %s2293_s20 = smov 8  }
 0x4af   : > { %1911 = dma.vmem_to_hbm [thread:$0]  (%p1940_p7), %s2644_s18, 2048, %s2771_s12, [#allocation15], %s2292_s30, %s2292_s30, %s2293_s20  }
 0x4b0   : > { %2247 = dma.done.wait (%p1940_p7), [#allocation6], 128  }
 0x4b1   : > { %2249 = vsyncadd (%p1940_p7), [#allocation6], 4294967168 }
 0x4b2   : > { %2251 = dma.done.wait (%p1940_p7), [#allocation15], 2048  }
 0x4b3   : > { %2253 = vsyncadd (%p1940_p7), [#allocation15], 4294965248 }
 0x4b4 PF: > { %s28_s10 = sadd.s32 1, %s2276_s10   ;;  %s2772_s19 = sld [smem:[#allocation21_spill]] }
 0x4b5   : > { %p25_p9 = scmp.ge.s32.totalorder %s28_s10, 7   ;;  %s2773_s29 = sld [smem:[#allocation23_spill]] }
 0x4b6   : > { %s2774_s18 = sld [smem:[#allocation22_spill]]  ;;  %s2775_s27 = smov %s2260_s28 }
 0x4b7   : > { %s2777_s30 = smov %s2272_s9  ;;  %27 = sbr.rel (!%p25_p9) target bundleno = 16 (0x10), region = 154 }
 0x4ba   : > { %s2776_s28 = smov %s2772_s19 }
 0x4bc   : > { %s2778_s9 = smov %s2774_s18 }
 0x4be   :  { %1334 = vsyncpa [#allocation5], 1 }
 0x4bf   :  { %1336 = vsyncpa [#allocation5 + $0x1], 1 }
 0x4c0   :  { %1337 = vsyncpa [#allocation8], 1 }
 0x4c1   :  { %1338 = vsyncpa [#allocation11], 1 }
 0x4c2   :  { %1340 = vsyncpa [#allocation11 + $0x1], 1 }
 0x4c3   :  { %1341 = vsyncpa [#allocation6], 1 }
 0x4c4   :  { %1343 = vsyncpa [#allocation6 + $0x1], 1 }
 0x4c5   :  { %1344 = vsyncpa [#allocation15], 1 }

</bundles_post_ra>
